<compile_context>
chip_gen: v6e
topology: v6e:2x2x1
jax: 0.10.0
libtpu: 0.0.40
codegen_flags: <defaults>
</compile_context>

<pallas_src>
import functools

import jax
import jax.numpy as jnp
from jax.experimental import pallas as pl
from jax.experimental.pallas import tpu as pltpu


def _round_up(x, m):
    return ((x + m - 1) // m) * m


def value_net_kernel(x_ref, w1_ref, b1_ref, w2_ref, b2_ref, o_ref):
    # x_ref:  (TM, D)          f32  state tile (pipelined)
    # w1_ref: (D, H)           f32  hidden weights   (VMEM-resident)
    # b1_ref: (1, H)           f32  hidden bias      (VMEM-resident)
    # w2_ref: (1, H)           f32  output weights^T (VMEM-resident)
    # b2_ref: (1, 1)           f32  output bias (SMEM scalar)
    # o_ref:  (TM//128, 128)   f32  lane-dense values: row r, lane l = batch r*128+l
    h = jnp.dot(x_ref[...], w1_ref[...], preferred_element_type=jnp.float32)  # MXU
    h = jnp.maximum(h + b1_ref[...], 0.0)          # bias + ReLU (VPU)
    hw = h * w2_ref[...]                           # fold in output weights (VPU)
    tm, hidden = hw.shape
    hw3 = hw.reshape(tm // 128, 128, hidden)       # free sublane-split reshape
    # Lane reduce of each 128-row group -> lane-dense (TM//128, 128) block.
    o_ref[...] = jnp.sum(hw3, axis=-1) + b2_ref[0, 0]


@functools.partial(jax.jit, static_argnames=("block_m",))
def value_network_forward(state, w1, b1, w2, b2, *, block_m=4096):
    """state: (B, state_dim) f32 -> (B, 1) f32.

    Weights use the (in_features, out_features) layout, i.e. the transpose of
    PyTorch nn.Linear.weight: out = ReLU(state @ W1 + b1) @ W2 + b2.
    """
    B, D = state.shape
    H = w1.shape[1]

    x = state.astype(jnp.float32)                       # no bf16 wrapper pass
    w1r = w1.astype(jnp.float32)
    b1r = jnp.reshape(b1, (1, H)).astype(jnp.float32)
    w2r = jnp.reshape(w2, (1, H)).astype(jnp.float32)   # (H,1) -> (1,H) row
    b2r = jnp.reshape(b2, (1, 1)).astype(jnp.float32)

    # Lane-dense output: ceil(B/128) rows of 128 values, flat order == batch order.
    out_rows = pl.cdiv(B, 128)
    b128 = out_rows * 128

    # Batch tile. tm is a multiple of 128; multi-tile grids use multiples of 1024
    # so the (TM//128, 128) output block stays (8,128)-aligned.
    if b128 <= 1024:
        tm = b128                                       # single tile
    else:
        # Aim for >= 2 tiles so v7x's 2 TensorCores both get work.
        half = _round_up((b128 + 1) // 2, 1024)
        tm = min(max(_round_up(block_m, 1024), 1024), half)
    grid = (pl.cdiv(b128, tm),)

    if B < tm:
        # Tiny batches only (< one tile): pad x to a single clean tile. Large
        # batches are never padded; the ragged tail tile is partially valid.
        x = jnp.pad(x, ((0, tm - B), (0, 0)))

    out = pl.pallas_call(
        value_net_kernel,
        out_shape=jax.ShapeDtypeStruct((out_rows, 128), jnp.float32),
        grid=grid,
        in_specs=[
            pl.BlockSpec((tm, D), lambda i: (i, 0)),             # state tile (pipelined)
            pl.BlockSpec((D, H), lambda i: (0, 0)),              # W1   (resident)
            pl.BlockSpec((1, H), lambda i: (0, 0)),              # b1   (resident)
            pl.BlockSpec((1, H), lambda i: (0, 0)),              # W2^T (resident)
            pl.BlockSpec(memory_space=pltpu.MemorySpace.SMEM),   # b2 scalar
        ],
        out_specs=pl.BlockSpec((tm // 128, 128), lambda i: (i, 0)),
        compiler_params=pltpu.CompilerParams(
            dimension_semantics=("parallel",),                   # shard across v7x's 2 TCs
        ),
        cost_estimate=pl.CostEstimate(
            flops=2 * B * (D * H + H),
            bytes_accessed=B * D * 4 + D * H * 4 + 2 * H * 4 + 4 + b128 * 4,
            transcendentals=0,
        ),
    )(x, w1r, b1r, w2r, b2r)

    # (out_rows, 128) row-major is exactly batch order; drop the padded tail.
    return out.reshape(-1)[:B].reshape(B, 1)


def init_value_network_params(key, state_dim, hidden=128):
    """PyTorch nn.Linear-style init (uniform +/- 1/sqrt(fan_in)), (in,out) layout."""
    k1, k2, k3, k4 = jax.random.split(key, 4)
    bound1 = 1.0 / jnp.sqrt(jnp.float32(state_dim))
    bound2 = 1.0 / jnp.sqrt(jnp.float32(hidden))
    w1 = jax.random.uniform(k1, (state_dim, hidden), jnp.float32, -bound1, bound1)
    b1 = jax.random.uniform(k2, (1, hidden), jnp.float32, -bound1, bound1)
    w2 = jax.random.uniform(k3, (hidden, 1), jnp.float32, -bound2, bound2)
    b2 = jax.random.uniform(k4, (1, 1), jnp.float32, -bound2, bound2)
    return w1, b1, w2, b2


def _reference(state, w1, b1, w2, b2):
    # Plain f32 math, same as the PyTorch module.
    return jnp.maximum(state @ w1 + b1, 0.0) @ w2 + b2


if __name__ == "__main__":
    key = jax.random.PRNGKey(0)
    k_params, k_a, k_b, k_c = jax.random.split(key, 4)

    state_dim = 32
    w1, b1, w2, b2 = init_value_network_params(k_params, state_dim)

    # Batch sizes exercise: tiny unaligned batch (single tile), multi-row
    # lane-dense output, and a multi-tile grid with a ragged tail.
    for ks, batch in zip((k_a, k_b, k_c), (20, 300, 2100)):
        state = jax.random.normal(ks, (batch, state_dim), jnp.float32)
        out = jax.block_until_ready(value_network_forward(state, w1, b1, w2, b2))
        ref = _reference(state, w1, b1, w2, b2)
        assert out.shape == (batch, 1), out.shape
        assert jnp.allclose(out, ref, atol=1e-4, rtol=1e-4), (
            batch, float(jnp.max(jnp.abs(out - ref))))

    print("KERNEL_OK")
</pallas_src>

<mosaic_0001>
module attributes {stable_mosaic.version = 11 : i64} {
  func.func @value_net_kernel(%arg0: i32, %arg1: memref<128x32xf32, #tpu.memory_space<vmem>>, %arg2: memref<32x128xf32, #tpu.memory_space<vmem>>, %arg3: memref<1x128xf32, #tpu.memory_space<vmem>>, %arg4: memref<1x128xf32, #tpu.memory_space<vmem>>, %arg5: memref<1x1xf32, #tpu.memory_space<smem>>, %arg6: memref<1x128xf32, #tpu.memory_space<vmem>>) attributes {dimension_semantics = [#tpu.dimension_semantics<parallel>], iteration_bounds = array<i64: 1>, scalar_prefetch = 0 : i64, scratch_operands = 0 : i64, tpu.core_type = #tpu.core_type<tc>, window_params = [{transform_indices = @transform_0, window_bounds = array<i64: 128, 32>}, {pipeline_mode = #tpu.pipeline_mode<synchronous>, transform_indices = @transform_1, window_bounds = array<i64: 32, 128>}, {pipeline_mode = #tpu.pipeline_mode<synchronous>, transform_indices = @transform_2, window_bounds = array<i64: 1, 128>}, {pipeline_mode = #tpu.pipeline_mode<synchronous>, transform_indices = @transform_3, window_bounds = array<i64: 1, 128>}, {transform_indices = @transform_4, window_bounds = array<i64: 1, 1>}, {transform_indices = @transform_5, window_bounds = array<i64: 1, 128>}]} {
    %c0 = arith.constant 0 : index
    %c0_0 = arith.constant 0 : index
    %0 = vector.load %arg1[%c0, %c0_0] : memref<128x32xf32, #tpu.memory_space<vmem>>, vector<128x32xf32>
    %c0_1 = arith.constant 0 : index
    %c0_2 = arith.constant 0 : index
    %1 = vector.load %arg2[%c0_1, %c0_2] : memref<32x128xf32, #tpu.memory_space<vmem>>, vector<32x128xf32>
    %cst = arith.constant dense<0.000000e+00> : vector<128x128xf32>
    %2 = tpu.matmul %0, %1, %cst {dimension_numbers = #tpu.dot_dimension_numbers<[1], [0], [0], [1], [0, 0, 1, 1], [], []>} : vector<128x32xf32>, vector<32x128xf32>, vector<128x128xf32> -> vector<128x128xf32>
    %c0_3 = arith.constant 0 : index
    %c0_4 = arith.constant 0 : index
    %3 = vector.load %arg3[%c0_3, %c0_4] : memref<1x128xf32, #tpu.memory_space<vmem>>, vector<1x128xf32>
    %4 = vector.broadcast %3 : vector<1x128xf32> to vector<128x128xf32>
    %5 = arith.addf %2, %4 : vector<128x128xf32>
    %cst_5 = arith.constant 0.000000e+00 : f32
    %6 = vector.broadcast %cst_5 : f32 to vector<128x128xf32>
    %7 = arith.maximumf %5, %6 : vector<128x128xf32>
    %c0_6 = arith.constant 0 : index
    %c0_7 = arith.constant 0 : index
    %8 = vector.load %arg4[%c0_6, %c0_7] : memref<1x128xf32, #tpu.memory_space<vmem>>, vector<1x128xf32>
    %9 = vector.broadcast %8 : vector<1x128xf32> to vector<128x128xf32>
    %10 = arith.mulf %7, %9 : vector<128x128xf32>
    %11 = vector.shape_cast %10 : vector<128x128xf32> to vector<1x128x128xf32>
    %cst_8 = arith.constant dense<0.000000e+00> : vector<1x128xf32>
    %12 = vector.multi_reduction <add>, %11, %cst_8 [2] : vector<1x128x128xf32> to vector<1x128xf32>
    %c0_9 = arith.constant 0 : index
    %c0_10 = arith.constant 0 : index
    %13 = memref.load %arg5[%c0_9, %c0_10] : memref<1x1xf32, #tpu.memory_space<smem>>
    %14 = vector.broadcast %13 : f32 to vector<1x128xf32>
    %15 = arith.addf %12, %14 : vector<1x128xf32>
    %c0_11 = arith.constant 0 : index
    %c0_12 = arith.constant 0 : index
    %16 = vector.load %arg6[%c0_11, %c0_12] : memref<1x128xf32, #tpu.memory_space<vmem>>, vector<1x128xf32>
    tpu.vector_store %arg6[%c0_11, %c0_12], %15 {strides = array<i32>} : memref<1x128xf32, #tpu.memory_space<vmem>>, vector<1x128xf32>,
    return
  }
  func.func @transform_0(%arg0: i32) -> (i32, i32) {
    %c0_i32 = arith.constant 0 : i32
    %c0_i32_0 = arith.constant 0 : i32
    return %arg0, %c0_i32 : i32, i32
  }
  func.func @transform_1(%arg0: i32) -> (i32, i32) {
    %c0_i32 = arith.constant 0 : i32
    %c0_i32_0 = arith.constant 0 : i32
    %c0_i32_1 = arith.constant 0 : i32
    return %c0_i32, %c0_i32_0 : i32, i32
  }
  func.func @transform_2(%arg0: i32) -> (i32, i32) {
    %c0_i32 = arith.constant 0 : i32
    %c0_i32_0 = arith.constant 0 : i32
    %c0_i32_1 = arith.constant 0 : i32
    return %c0_i32, %c0_i32_0 : i32, i32
  }
  func.func @transform_3(%arg0: i32) -> (i32, i32) {
    %c0_i32 = arith.constant 0 : i32
    %c0_i32_0 = arith.constant 0 : i32
    %c0_i32_1 = arith.constant 0 : i32
    return %c0_i32, %c0_i32_0 : i32, i32
  }
  func.func @transform_4(%arg0: i32) -> (i32, i32) {
    %c0_i32 = arith.constant 0 : i32
    %c0_i32_0 = arith.constant 0 : i32
    %c0_i32_1 = arith.constant 0 : i32
    return %c0_i32, %c0_i32_0 : i32, i32
  }
  func.func @transform_5(%arg0: i32) -> (i32, i32) {
    %c0_i32 = arith.constant 0 : i32
    %c0_i32_0 = arith.constant 0 : i32
    return %arg0, %c0_i32 : i32, i32
  }
}

</mosaic_0001>

<bundles_post_ra>
// kernel: value_network_forward.1
= control target key start
LH: loop header
LB: loop body
LE: loop exit
PB: predicated region body
PF: predicated region fallthrough
CT: control target
= control target key end

     0   :  { %vm48_vm0 = vcmask 261120   ;;  %vm358_vm1 = vcmask 130112   ;;  %vm365_vm2 = vcmask 195712   ;;  %vm372_vm3 = vcmask 261312   ;;  %s772_s1 = inlined_call_operand.vmem [shape: f32[32,128], index: 1, kind: input, shape index: {}]   ;;  %s773_s0 = inlined_call_operand.vmem [shape: f32[128,32], index: 0, kind: input, shape index: {}]   ;;  %s774_s2 = inlined_call_operand.vmem [shape: f32[1,128], index: 2, kind: input, shape index: {}]   ;;  %s775_s3 = inlined_call_operand.vmem [shape: f32[1,128], index: 3, kind: input, shape index: {}]   ;;  %s776_s4 = inlined_call_operand.<no memory space> [shape: f32[1,1], index: 4, kind: input, shape index: {}]   ;;  %s777_s5 = inlined_call_operand.vmem [shape: f32[1,128], index: 5, kind: output, shape index: {}]  }
   0x1   :  { %v40_v0 = vld [vmem:[%s772_s1 + $0x18] sm:$0xff]  ;;  %v39_v1 = vld [vmem:[%s772_s1 + $0x10] sm:$0xff]  ;;  %v38_v2 = vld [vmem:[%s772_s1 + $0x8] sm:$0xff]  ;;  %vm379_vm4 = vcmask 326912   ;;  %vm386_vm5 = vcmask 392512   ;;  %vm393_vm6 = vcmask 458112  }
   0x2   :  { %502 = vmatprep.subr.mxu0 %v40_v0  ;;  %534 = vmatprep.subr.mxu1 %v40_v0  ;;  %v37_v3 = vld [vmem:[%s772_s1] sm:$0xff]  ;;  %v22_v6 = vld [vmem:[%s773_s0 + $0x8] sm:$0xff]  ;;  %v23_v8 = vld [vmem:[%s773_s0 + $0x10] sm:$0xff]  ;;  %vm400_vm7 = vcmask 523712   ;;  %vm407_vm8 = vcmask 589312   ;;  %vm414_vm9 = vcmask 654912  }
   0x3   :  { %503 = vmatpush3.msra.mxu0 %v40_v0  ;;  %538 = vmatpush3.msra.mxu1 %v40_v0  ;;  %v21_v4 = vld [vmem:[%s773_s0] sm:$0xff]  ;;  %v30_v7 = vld [vmem:[%s773_s0 + $0x48] sm:$0xff]  ;;  %v31_v9 = vld [vmem:[%s773_s0 + $0x50] sm:$0xff]  ;;  %vm421_vm10 = vcmask 720512   ;;  %vm428_vm11 = vcmask 786112   ;;  %vm435_vm12 = vcmask 851712  }
   0x4   :  { %504 = vmatprep.subr.mxu0 %v39_v1  ;;  %535 = vmatprep.subr.mxu1 %v39_v1  ;;  %v29_v5 = vld [vmem:[%s773_s0 + $0x40] sm:$0xff]  ;;  %v24_v10 = vld [vmem:[%s773_s0 + $0x18] sm:$0xff]  ;;  %v26_v14 = vld [vmem:[%s773_s0 + $0x28] sm:$0xff]  ;;  %vm442_vm13 = vcmask 917312   ;;  %vm449_vm14 = vcmask 982912   ;;  %vm456_vm15 = vcmask 1048512  }
   0x5   :  { %505 = vmatpush3.msra.mxu0 %v39_v1  ;;  %539 = vmatpush3.msra.mxu1 %v39_v1  ;;  %v32_v11 = vld [vmem:[%s773_s0 + $0x58] sm:$0xff]  ;;  %v25_v12 = vld [vmem:[%s773_s0 + $0x20] sm:$0xff]  ;;  %v34_v15 = vld [vmem:[%s773_s0 + $0x68] sm:$0xff] }
   0x6   :  { %506 = vmatprep.subr.mxu0 %v38_v2  ;;  %536 = vmatprep.subr.mxu1 %v38_v2  ;;  %v33_v13 = vld [vmem:[%s773_s0 + $0x60] sm:$0xff]  ;;  %v27_v16 = vld [vmem:[%s773_s0 + $0x30] sm:$0xff]  ;;  %v28_v18 = vld [vmem:[%s773_s0 + $0x38] sm:$0xff] }
   0x7   :  { %507 = vmatpush3.msra.mxu0 %v38_v2  ;;  %540 = vmatpush3.msra.mxu1 %v38_v2  ;;  %v35_v17 = vld [vmem:[%s773_s0 + $0x70] sm:$0xff]  ;;  %v36_v19 = vld [vmem:[%s773_s0 + $0x78] sm:$0xff]  ;;  %v651_v20 = vld [vmem:[%s774_s2] ss:$0 sm:$0xff] }
   0x8   :  { %508 = vmatprep.subr.mxu0 %v37_v3  ;;  %537 = vmatprep.subr.mxu1 %v37_v3  ;;  %v658_v27 = vld [vmem:[%s775_s3] ss:$0 sm:$0xff] }
   0x9   :  { %509 = vmatpush3.msra.mxu0 %v37_v3  ;;  %541 = vmatpush3.msra.mxu1 %v37_v3 }
   0xa   :  { %510 = vmatprep.mubr.msk.f32.mxu0 %vm48_vm0, %v21_v4  ;;  %522 = vmatprep.mubr.msk.f32.mxu1 %vm48_vm0, %v29_v5 }
   0xb   :  { %511 = vmatmul.mubr.msk.f32.vlgmr.msra.gmra.mxu0 %vm48_vm0, %v22_v6  ;;  %523 = vmatmul.mubr.msk.f32.vlgmr.msra.gmra.mxu1 %vm48_vm0, %v30_v7 }
   0xc   :  { %513 = vmatprep.mubr.msk.f32.mxu0 %vm48_vm0, %v23_v8  ;;  %525 = vmatprep.mubr.msk.f32.mxu1 %vm48_vm0, %v31_v9 }
   0xf   :  { %514 = vmatmul.mubr.msk.f32.gmra.mxu0 %vm48_vm0, %v24_v10  ;;  %526 = vmatmul.mubr.msk.f32.gmra.mxu1 %vm48_vm0, %v32_v11 }
  0x10   :  { %516 = vmatprep.mubr.msk.f32.mxu0 %vm48_vm0, %v25_v12  ;;  %528 = vmatprep.mubr.msk.f32.mxu1 %vm48_vm0, %v33_v13 }
  0x13   :  { %517 = vmatmul.mubr.msk.f32.gmra.mxu0 %vm48_vm0, %v26_v14  ;;  %529 = vmatmul.mubr.msk.f32.gmra.mxu1 %vm48_vm0, %v34_v15 }
  0x14   :  { %519 = vmatprep.mubr.msk.f32.mxu0 %vm48_vm0, %v27_v16  ;;  %531 = vmatprep.mubr.msk.f32.mxu1 %vm48_vm0, %v35_v17 }
  0x17   :  { %520 = vmatmul.mubr.msk.f32.gmra.mxu0 %vm48_vm0, %v28_v18  ;;  %532 = vmatmul.mubr.msk.f32.gmra.mxu1 %vm48_vm0, %v36_v19 }
  0xcb   :  { %v512_v21 = vpop.f32.mrf.mxu0  ;;  %v524_v22 = vpop.f32.mrf.mxu1 }
  0xcc   :  { %v169_v23 = vadd.f32 %v512_v21, %v651_v20  ;;  %v209_v24 = vadd.f32 %v524_v22, %v651_v20 }
  0xcd   :  { %v163_v25 = vpop.f32.mrf.mxu0  ;;  %v203_v26 = vpop.f32.mrf.mxu1 }
  0xce   :  { %v243_v28 = vmax.f32 %v169_v23, 0.0  ;;  %v251_v29 = vmax.f32 %v209_v24, 0.0  ;;  %v164_v30 = vadd.f32 %v651_v20, %v163_v25  ;;  %v204_v36 = vadd.f32 %v651_v20, %v203_v26 }
  0xcf   :  { %v515_v31 = vpop.f32.mrf.mxu0  ;;  %v527_v32 = vpop.f32.mrf.mxu1  ;;  %v347_v23 = vlaneseq }
  0xd0   :  { %v179_v33 = vadd.f32 %v515_v31, %v651_v20  ;;  %v274_v34 = vmul.f32 %v658_v27, %v251_v29  ;;  %v242_v35 = vmax.f32 %v164_v30, 0.0  ;;  %v219_v38 = vadd.f32 %v527_v32, %v651_v20 }
  0xd1   :  { %v173_v37 = vpop.f32.mrf.mxu0  ;;  %v266_v39 = vmul.f32 %v658_v27, %v243_v28  ;;  %v213_v41 = vpop.f32.mrf.mxu1  ;;  %v250_v46 = vmax.f32 %v204_v36, 0.0  ;;  %v692_v25 = vand.u32 127, %v347_v23  ;;  %v694_v29 = vshrl.u32 %v347_v23, 7 }
  0xd2   :  { %v245_v40 = vmax.f32 %v179_v33, 0.0  ;;  %299 = vadd.xlane.f32.xlu1 %v274_v34  ;;  %v253_v42 = vmax.f32 %v219_v38, 0.0  ;;  %v174_v44 = vadd.f32 %v651_v20, %v173_v37  ;;  %v214_v47 = vadd.f32 %v651_v20, %v213_v41 }
  0xd3   :  { %283 = vadd.xlane.f32.xlu0 %v266_v39  ;;  %v518_v43 = vpop.f32.mrf.mxu0  ;;  %v265_v48 = vmul.f32 %v658_v27, %v242_v35  ;;  %v530_v51 = vpop.f32.mrf.mxu1  ;;  %v273_v57 = vmul.f32 %v658_v27, %v250_v46  ;;  %v353_v30 = vadd.s32 4294967288, %v692_v25  ;;  %v360_v31 = vadd.s32 4294967280, %v692_v25 }
  0xd4   :  { %v268_v45 = vmul.f32 %v658_v27, %v245_v40  ;;  %v276_v50 = vmul.f32 %v658_v27, %v253_v42  ;;  %v244_v53 = vmax.f32 %v174_v44, 0.0  ;;  %v189_v54 = vadd.f32 %v518_v43, %v651_v20 }
  0xd5   :  { %v183_v49 = vpop.f32.mrf.mxu0  ;;  %v252_v55 = vmax.f32 %v214_v47, 0.0  ;;  %v223_v59 = vpop.f32.mrf.mxu1  ;;  %v229_v4 = vadd.f32 %v530_v51, %v651_v20  ;;  %v351_v33 = vsub.s32 %v692_v25, %v694_v29  ;;  %v367_v36 = vadd.s32 4294967272, %v692_v25 }
  0xd6   :  { %287 = vadd.xlane.f32.xlu1 %v268_v45  ;;  %v184_v56 = vadd.f32 %v651_v20, %v183_v49  ;;  %v247_v60 = vmax.f32 %v189_v54, 0.0  ;;  %v267_v62 = vmul.f32 %v658_v27, %v244_v53  ;;  %v224_v7 = vadd.f32 %v651_v20, %v223_v59 }
  0xd7   :  { %281 = vadd.xlane.f32.xlu0 %v265_v48  ;;  %v521_v52 = vpop.f32.mrf.mxu0  ;;  %v275_v1 = vmul.f32 %v658_v27, %v252_v55  ;;  %v533_v2 = vpop.f32.mrf.mxu1  ;;  %v255_v10 = vmax.f32 %v229_v4, 0.0  ;;  %v356_v37 = vsub.s32 %v353_v30, %v694_v29  ;;  %v363_v39 = vsub.s32 %v360_v31, %v694_v29 }
  0xd8   :  { %v199_v61 = vadd.f32 %v521_v52, %v651_v20  ;;  %v246_v63 = vmax.f32 %v184_v56, 0.0  ;;  %v270_v5 = vmul.f32 %v658_v27, %v247_v60  ;;  %v239_v11 = vadd.f32 %v533_v2, %v651_v20 }
  0xd9   :  { %v193_v58 = vpop.f32.mrf.mxu0  ;;  %v233_v9 = vpop.f32.mrf.mxu1  ;;  %v254_v13 = vmax.f32 %v224_v7, 0.0  ;;  %v278_v17 = vmul.f32 %v658_v27, %v255_v10  ;;  %v713_v40 = vadd.s32 4294967224, %v692_v25  ;;  %v716_v41 = vadd.s32 4294967232, %v692_v25 }
  0xda   :  { %303 = vadd.xlane.f32.xlu1 %v276_v50  ;;  %v194_v0 = vadd.f32 %v651_v20, %v193_v58  ;;  %v249_v3 = vmax.f32 %v199_v61, 0.0  ;;  %v269_v8 = vmul.f32 %v658_v27, %v246_v63  ;;  %v234_v14 = vadd.f32 %v651_v20, %v233_v9 }
  0xdb   :  { %297 = vadd.xlane.f32.xlu0 %v273_v57  ;;  %v257_v16 = vmax.f32 %v239_v11, 0.0  ;;  %v277_v19 = vmul.f32 %v658_v27, %v254_v13  ;;  %v374_v43 = vadd.s32 4294967264, %v692_v25  ;;  %v720_v45 = vadd.s32 4294967208, %v692_v25 }
  0xdc   :  { %v248_v6 = vmax.f32 %v194_v0, 0.0  ;;  %v272_v12 = vmul.f32 %v658_v27, %v249_v3  ;;  %v256_v18 = vmax.f32 %v234_v14, 0.0  ;;  %v381_v48 = vadd.s32 4294967256, %v692_v25 }
  0xdd   :  { %v280_v21 = vmul.f32 %v658_v27, %v257_v16  ;;  %v370_v49 = vsub.s32 %v367_v36, %v694_v29  ;;  %v416_v50 = vadd.s32 4294967216, %v692_v25  ;;  %v395_v54 = vadd.s32 4294967240, %v692_v25 }
  0xde   :  { %285 = vadd.xlane.f32.xlu1 %v267_v62  ;;  %v271_v15 = vmul.f32 %v658_v27, %v248_v6  ;;  %v279_v22 = vmul.f32 %v658_v27, %v256_v18  ;;  %v701_v27 = vstv %s776_s4  ;;  %v412_v55 = vsub.s32 %v713_v40, %v694_v29 }
  0xdf   :  { %301 = vadd.xlane.f32.xlu0 %v275_v1  ;;  %v405_v56 = vsub.s32 %v716_v41, %v694_v29  ;;  %v377_v58 = vsub.s32 %v374_v43, %v694_v29  ;;  %v388_v59 = vadd.s32 4294967248, %v692_v25  ;;  %v426_v61 = vsub.s32 %v720_v45, %v694_v29 }
  0xe0   :  { %v384_v62 = vsub.s32 %v381_v48, %v694_v29  ;;  %v419_v2 = vsub.s32 %v416_v50, %v694_v29  ;;  %v437_v9 = vadd.s32 4294967192, %v692_v25  ;;  %v430_v14 = vadd.s32 4294967200, %v692_v25 }
  0xe2   :  { %291 = vadd.xlane.f32.xlu1 %v270_v5  ;;  %v398_v5 = vsub.s32 %v395_v54, %v694_v29 }
  0xe3   :  { %289 = vadd.xlane.f32.xlu0 %v269_v8  ;;  %v391_v8 = vsub.s32 %v388_v59, %v694_v29 }
  0xe6   :  { %295 = vadd.xlane.f32.xlu1 %v272_v12 }
  0xe7   :  { %293 = vadd.xlane.f32.xlu0 %v271_v15 }
  0xea   :  { %307 = vadd.xlane.f32.xlu1 %v278_v17 }
  0xeb   :  { %305 = vadd.xlane.f32.xlu0 %v277_v19 }
  0xee   :  { %311 = vadd.xlane.f32.xlu1 %v280_v21  ;;  %v451_v21 = vadd.s32 4294967176, %v692_v25 }
  0xef   :  { %309 = vadd.xlane.f32.xlu0 %v279_v22 }
 0x15b   :  { %v690_v20 = vpop.xlane.xlu1 %299 }
 0x15c   :  { %v284_v24 = vpop.xlane.xlu0 %283  ;;  %v324_v18 = vadd.f32 %v701_v27, %v690_v20  ;;  %v433_v20 = vsub.s32 %v430_v14, %v694_v29 }
 0x15d   :  { %v316_v38 = vadd.f32 %v701_v27, %v284_v24  ;;  %v440_v24 = vsub.s32 %v437_v9, %v694_v29 }
 0x15f   :  { %v288_v26 = vpop.xlane.xlu1 %287  ;;  %v357_v51 = vrot.slane %v316_v38, %v356_v37  ;;  %v413_v37 = vrot.slane %v324_v18, %v412_v55 }
 0x160   :  { %v282_v28 = vpop.xlane.xlu0 %281  ;;  %v318_v52 = vadd.f32 %v701_v27, %v288_v26 }
 0x161   :  { %v315_v34 = vadd.f32 %v701_v27, %v282_v28  ;;  %v444_v28 = vadd.s32 4294967184, %v692_v25 }
 0x162   :  { %v371_v4 = vrot.slane %v318_v52, %v370_v49 }
 0x163   :  { %v703_v32 = vpop.xlane.xlu1 %303  ;;  %v352_v44 = vrot.slane %v315_v34, %v351_v33 }
 0x164   :  { %v298_v35 = vpop.xlane.xlu0 %297  ;;  %v326_v30 = vadd.f32 %v701_v27, %v703_v32 }
 0x165   :  { %v359_v60 = vsel %vm358_vm1, %v357_v51, %v352_v44  ;;  %v323_v15 = vadd.f32 %v701_v27, %v298_v35 }
 0x166   :  { %v427_v43 = vrot.slane %v326_v30, %v426_v61 }
 0x167   :  { %v286_v42 = vpop.xlane.xlu1 %285  ;;  %v406_v34 = vrot.slane %v323_v15, %v405_v56 }
 0x168   :  { %v317_v46 = vadd.f32 %v701_v27, %v286_v42  ;;  %v302_v47 = vpop.xlane.xlu0 %301  ;;  %v447_v42 = vsub.s32 %v444_v28, %v694_v29 }
 0x169   :  { %v325_v22 = vadd.f32 %v701_v27, %v302_v47 }
 0x16a   :  { %v364_v53 = vrot.slane %v317_v46, %v363_v39  ;;  %v454_v39 = vsub.s32 %v451_v21, %v694_v29 }
 0x16b   :  { %v292_v57 = vpop.xlane.xlu1 %291  ;;  %v420_v32 = vrot.slane %v325_v22, %v419_v2 }
 0x16c   :  { %v320_v63 = vadd.f32 %v701_v27, %v292_v57  ;;  %v290_v0 = vpop.xlane.xlu0 %289  ;;  %v366_v1 = vsel %vm365_vm2, %v364_v53, %v359_v60 }
 0x16d   :  { %v319_v3 = vadd.f32 %v701_v27, %v290_v0  ;;  %v373_v11 = vsel %vm372_vm3, %v371_v4, %v366_v1 }
 0x16e   :  { %v385_v10 = vrot.slane %v320_v63, %v384_v62 }
 0x16f   :  { %v378_v6 = vrot.slane %v319_v3, %v377_v58  ;;  %v296_v7 = vpop.xlane.xlu1 %295 }
 0x170   :  { %v322_v12 = vadd.f32 %v701_v27, %v296_v7  ;;  %v294_v13 = vpop.xlane.xlu0 %293 }
 0x171   :  { %v380_v16 = vsel %vm379_vm4, %v378_v6, %v373_v11  ;;  %v321_v17 = vadd.f32 %v701_v27, %v294_v13 }
 0x172   :  { %v399_v19 = vrot.slane %v322_v12, %v398_v5  ;;  %v387_v31 = vsel %vm386_vm5, %v385_v10, %v380_v16 }
 0x173   :  { %v392_v23 = vrot.slane %v321_v17, %v391_v8  ;;  %v308_v26 = vpop.xlane.xlu1 %307 }
 0x174   :  { %v306_v33 = vpop.xlane.xlu0 %305  ;;  %v328_v25 = vadd.f32 %v701_v27, %v308_v26 }
 0x175   :  { %v394_v35 = vsel %vm393_vm6, %v392_v23, %v387_v31  ;;  %v327_v36 = vadd.f32 %v701_v27, %v306_v33 }
 0x176   :  { %v401_v38 = vsel %vm400_vm7, %v399_v19, %v394_v35  ;;  %v441_v50 = vrot.slane %v328_v25, %v440_v24 }
 0x177   :  { %v408_v40 = vsel %vm407_vm8, %v406_v34, %v401_v38  ;;  %v312_v41 = vpop.xlane.xlu1 %311  ;;  %v434_v48 = vrot.slane %v327_v36, %v433_v20 }
 0x178   :  { %v415_v44 = vsel %vm414_vm9, %v413_v37, %v408_v40  ;;  %v330_v45 = vadd.f32 %v701_v27, %v312_v41  ;;  %v310_v46 = vpop.xlane.xlu0 %309 }
 0x179   :  { %v422_v47 = vsel %vm421_vm10, %v420_v32, %v415_v44  ;;  %v329_v49 = vadd.f32 %v701_v27, %v310_v46 }
 0x17a   :  { %v429_v51 = vsel %vm428_vm11, %v427_v43, %v422_v47  ;;  %v455_v52 = vrot.slane %v330_v45, %v454_v39 }
 0x17b   :  { %v436_v53 = vsel %vm435_vm12, %v434_v48, %v429_v51  ;;  %v448_v29 = vrot.slane %v329_v49, %v447_v42 }
 0x17c   :  { %v443_v54 = vsel %vm442_vm13, %v441_v50, %v436_v53 }
 0x17d   :  { %v450_v55 = vsel %vm449_vm14, %v448_v29, %v443_v54 }
 0x17e   :  { %v457_v56 = vsel %vm456_vm15, %v455_v52, %v450_v55 }
 0x17f   :  { %459 = vst [vmem:[%s777_s5] sm:$0x1] %v457_v56 }

</bundles_post_ra>
